<compile_context>
chip_gen: v5e
topology: v5e:2x2
jax: 0.10.0
libtpu: 0.0.40
codegen_flags: <defaults>
</compile_context>

<pallas_src>
import functools

import jax
import jax.numpy as jnp
from jax.experimental import pallas as pl
from jax.experimental.pallas import tpu as pltpu


def _round_up(x, m):
    return (x + m - 1) // m * m


def _hash_u32(x):
    """lowbias32-style uint32 mixer — plain VPU integer ops only."""
    x = x ^ (x >> 16)
    x = x * jnp.uint32(0x7FEB352D)
    x = x ^ (x >> 15)
    x = x * jnp.uint32(0x846CA68B)
    x = x ^ (x >> 16)
    return x


def _generator_kernel(seed_ref,              # SMEM (1,) int32
                      noise_ref,             # [TB, Kp]   (f32 or bf16)
                      w1_ref, b1_ref,        # [Kp, Hp], [1, Hp]
                      w2_ref, b2_ref,        # [Hp, Op], [1, Op]
                      out_ref,               # [TB, Op]   f32
                      *, dropout_rate, apply_dropout):
    # ---- Linear 1 (MXU, f32 accumulate) ----
    h = jnp.dot(noise_ref[...], w1_ref[...], preferred_element_type=jnp.float32)
    h = h + b1_ref[...]

    # ---- LeakyReLU(0.2) (VPU, f32) ----
    h = jnp.where(h > 0.0, h, 0.2 * h)

    # ---- Dropout(p), train mode. 1/(1-p) scale is folded into W2 by wrapper ----
    if apply_dropout and dropout_rate > 0.0:
        if dropout_rate >= 1.0:              # edge case: drop everything
            h = jnp.zeros_like(h)
        else:
            tb, hidden = h.shape
            # Global element index -> mask is per-element, differs across batch
            # tiles (program_id mixed in via the global row index) and is
            # invariant to the tiling choice.
            row = (jax.lax.broadcasted_iota(jnp.int32, (tb, hidden), 0)
                   + pl.program_id(0) * tb)
            col = jax.lax.broadcasted_iota(jnp.int32, (tb, hidden), 1)
            idx = (row * hidden + col).astype(jnp.uint32)
            seed = seed_ref[0].astype(jnp.uint32)
            bits = _hash_u32(idx + seed * jnp.uint32(0x9E3779B9))
            # Keep with probability (1 - p); use a 31-bit signed compare.
            bits31 = (bits >> 1).astype(jnp.int32)
            thresh = jnp.int32(int(dropout_rate * (1 << 31)))
            h = jnp.where(bits31 >= thresh, h, 0.0)

    # ---- Linear 2 (MXU, f32 accumulate) ----
    out = jnp.dot(h.astype(w2_ref.dtype), w2_ref[...],
                  preferred_element_type=jnp.float32)
    out = out + b2_ref[...]
    out_ref[...] = out.astype(out_ref.dtype)


def generator_forward(noise, w1, b1, w2, b2, seed, *, dropout_rate=0.1,
                      apply_dropout=True, use_bf16_mxu=False, block_rows=128):
    """Fused Generator MLP forward.

    noise: [B, K] f32, w1: [K, H], b1: [H], w2: [H, O], b2: [O], seed: int.
    Returns [B, O] f32.
    """
    B, K = noise.shape
    K2, H = w1.shape
    H2, O = w2.shape
    assert K == K2 and H == H2

    f32 = jnp.float32
    mxu_dtype = jnp.bfloat16 if use_bf16_mxu else jnp.float32

    # Pad feature dims to multiples of 128 (lane-dense, full MXU K-tiles) and the
    # batch to the row tile.  Zero padding is exact for this MLP.
    Kp = _round_up(K, 128)
    Hp = _round_up(H, 128)
    Op = _round_up(O, 128)
    TB = min(block_rows, _round_up(B, 16))   # 128-row tile target; >=16 for bf16
    Bp = _round_up(B, TB)

    # TODO(synk): for repeated training-step calls, hoist this padding/casting so
    # padded (and optionally bf16) parameters are prepared once, not per call.
    noise_p = jnp.zeros((Bp, Kp), f32).at[:B, :K].set(noise.astype(f32))
    noise_p = noise_p.astype(mxu_dtype)
    w1_p = jnp.zeros((Kp, Hp), f32).at[:K, :H].set(w1.astype(f32)).astype(mxu_dtype)
    b1_p = jnp.zeros((1, Hp), f32).at[:, :H].set(b1.reshape(1, H).astype(f32))

    w2_eff = w2.astype(f32)
    if apply_dropout and 0.0 < dropout_rate < 1.0:
        # Fold the dropout rescale into W2 (exact; removes a VPU mul per tile).
        w2_eff = w2_eff * (1.0 / (1.0 - dropout_rate))
    w2_p = jnp.zeros((Hp, Op), f32).at[:H, :O].set(w2_eff).astype(mxu_dtype)
    b2_p = jnp.zeros((1, Op), f32).at[:, :O].set(b2.reshape(1, O).astype(f32))

    seed_arr = jnp.asarray([seed], dtype=jnp.int32)

    kernel = functools.partial(_generator_kernel,
                               dropout_rate=float(dropout_rate),
                               apply_dropout=bool(apply_dropout))

    grid = (Bp // TB,)
    out_padded = pl.pallas_call(
        kernel,
        out_shape=jax.ShapeDtypeStruct((Bp, Op), jnp.float32),
        grid=grid,
        in_specs=[
            pl.BlockSpec(memory_space=pltpu.MemorySpace.SMEM),   # seed scalar
            pl.BlockSpec((TB, Kp), lambda i: (i, 0)),            # noise row tile
            pl.BlockSpec((Kp, Hp), lambda i: (0, 0)),            # W1 (resident)
            pl.BlockSpec((1, Hp), lambda i: (0, 0)),             # b1 (resident)
            pl.BlockSpec((Hp, Op), lambda i: (0, 0)),            # W2 (resident)
            pl.BlockSpec((1, Op), lambda i: (0, 0)),             # b2 (resident)
        ],
        out_specs=pl.BlockSpec((TB, Op), lambda i: (i, 0)),
        compiler_params=pltpu.CompilerParams(
            dimension_semantics=("parallel",)),                  # megacore on v7x
    )(seed_arr, noise_p, w1_p, b1_p, w2_p, b2_p)

    return out_padded[:B, :O]


def init_generator_params(key, noise_size=100, hidden_sizes=(128,),
                          output_size=128):
    """Deterministic parameter init (PyTorch-style uniform fan-in bounds)."""
    sizes = [noise_size] + list(hidden_sizes) + [output_size]
    params = []
    for i in range(len(sizes) - 1):
        key, kw, kb = jax.random.split(key, 3)
        bound = 1.0 / (sizes[i] ** 0.5)
        w = jax.random.uniform(kw, (sizes[i], sizes[i + 1]),
                               minval=-bound, maxval=bound, dtype=jnp.float32)
        b = jax.random.uniform(kb, (sizes[i + 1],),
                               minval=-bound, maxval=bound, dtype=jnp.float32)
        params.append((w, b))
    return params


if __name__ == "__main__":
    # Small shapes consistent with the module (noise_size kept at 100,
    # hidden/output scaled down from 512 -> 128).
    B, NOISE, HIDDEN, OUTPUT = 16, 100, 128, 128

    key = jax.random.PRNGKey(0)
    key, knoise = jax.random.split(key)
    noise = jax.random.normal(knoise, (B, NOISE), dtype=jnp.float32)
    (w1, b1), (w2, b2) = init_generator_params(
        key, noise_size=NOISE, hidden_sizes=(HIDDEN,), output_size=OUTPUT)

    # Pure-JAX reference (dropout disabled — RNG streams differ by design).
    h_ref = noise @ w1 + b1
    h_ref = jnp.where(h_ref > 0, h_ref, 0.2 * h_ref)
    ref = h_ref @ w2 + b2

    # 1) Eval path (no dropout), f32 MXU.
    out_eval = jax.block_until_ready(
        generator_forward(noise, w1, b1, w2, b2, seed=0,
                          dropout_rate=0.1, apply_dropout=False))
    assert out_eval.shape == (B, OUTPUT), out_eval.shape
    assert jnp.allclose(out_eval, ref, atol=1e-2, rtol=1e-2)

    # 2) Train path (dropout on): finite, deterministic per seed, != eval output.
    out_tr1 = jax.block_until_ready(
        generator_forward(noise, w1, b1, w2, b2, seed=123,
                          dropout_rate=0.1, apply_dropout=True))
    out_tr2 = jax.block_until_ready(
        generator_forward(noise, w1, b1, w2, b2, seed=123,
                          dropout_rate=0.1, apply_dropout=True))
    assert out_tr1.shape == (B, OUTPUT)
    assert bool(jnp.all(jnp.isfinite(out_tr1)))
    assert bool(jnp.array_equal(out_tr1, out_tr2))
    assert not bool(jnp.allclose(out_tr1, out_eval, atol=1e-6))

    # 3) bf16 MXU-input fast path (v6e/v7x), eval mode, loose tolerance.
    out_bf16 = jax.block_until_ready(
        generator_forward(noise, w1, b1, w2, b2, seed=0, dropout_rate=0.1,
                          apply_dropout=False, use_bf16_mxu=True))
    assert jnp.allclose(out_bf16, ref, atol=1e-1, rtol=1e-1)

    print("KERNEL_OK")
</pallas_src>

<mosaic_0001>
module attributes {stable_mosaic.version = 11 : i64} {
  func.func @_generator_kernel(%arg0: i32, %arg1: memref<1xi32, #tpu.memory_space<smem>>, %arg2: memref<16x128xf32, #tpu.memory_space<vmem>>, %arg3: memref<128x128xf32, #tpu.memory_space<vmem>>, %arg4: memref<1x128xf32, #tpu.memory_space<vmem>>, %arg5: memref<128x128xf32, #tpu.memory_space<vmem>>, %arg6: memref<1x128xf32, #tpu.memory_space<vmem>>, %arg7: memref<16x128xf32, #tpu.memory_space<vmem>>) attributes {dimension_semantics = [#tpu.dimension_semantics<parallel>], iteration_bounds = array<i64: 1>, scalar_prefetch = 0 : i64, scratch_operands = 0 : i64, tpu.core_type = #tpu.core_type<tc>, window_params = [{transform_indices = @transform_0, window_bounds = array<i64: 1>}, {transform_indices = @transform_1, window_bounds = array<i64: 16, 128>}, {pipeline_mode = #tpu.pipeline_mode<synchronous>, transform_indices = @transform_2, window_bounds = array<i64: 128, 128>}, {pipeline_mode = #tpu.pipeline_mode<synchronous>, transform_indices = @transform_3, window_bounds = array<i64: 1, 128>}, {pipeline_mode = #tpu.pipeline_mode<synchronous>, transform_indices = @transform_4, window_bounds = array<i64: 128, 128>}, {pipeline_mode = #tpu.pipeline_mode<synchronous>, transform_indices = @transform_5, window_bounds = array<i64: 1, 128>}, {transform_indices = @transform_6, window_bounds = array<i64: 16, 128>}]} {
    %c0 = arith.constant 0 : index
    %c0_0 = arith.constant 0 : index
    %0 = vector.load %arg2[%c0, %c0_0] : memref<16x128xf32, #tpu.memory_space<vmem>>, vector<16x128xf32>
    %c0_1 = arith.constant 0 : index
    %c0_2 = arith.constant 0 : index
    %1 = vector.load %arg3[%c0_1, %c0_2] : memref<128x128xf32, #tpu.memory_space<vmem>>, vector<128x128xf32>
    %cst = arith.constant dense<0.000000e+00> : vector<16x128xf32>
    %2 = tpu.matmul %0, %1, %cst {dimension_numbers = #tpu.dot_dimension_numbers<[1], [0], [0], [1], [0, 0, 1, 1], [], []>} : vector<16x128xf32>, vector<128x128xf32>, vector<16x128xf32> -> vector<16x128xf32>
    %c0_3 = arith.constant 0 : index
    %c0_4 = arith.constant 0 : index
    %3 = vector.load %arg4[%c0_3, %c0_4] : memref<1x128xf32, #tpu.memory_space<vmem>>, vector<1x128xf32>
    %4 = vector.broadcast %3 : vector<1x128xf32> to vector<16x128xf32>
    %5 = arith.addf %2, %4 : vector<16x128xf32>
    %cst_5 = arith.constant 0.000000e+00 : f32
    %6 = vector.broadcast %cst_5 : f32 to vector<16x128xf32>
    %7 = arith.cmpf ogt, %5, %6 : vector<16x128xf32>
    %cst_6 = arith.constant 2.000000e-01 : f32
    %8 = vector.broadcast %cst_6 : f32 to vector<16x128xf32>
    %9 = arith.mulf %8, %5 : vector<16x128xf32>
    %10 = arith.select %7, %5, %9 : vector<16x128xi1>, vector<16x128xf32>
    %c0_7 = arith.constant 0 : index
    %c0_8 = arith.constant 0 : index
    %11 = vector.load %arg5[%c0_7, %c0_8] : memref<128x128xf32, #tpu.memory_space<vmem>>, vector<128x128xf32>
    %cst_9 = arith.constant dense<0.000000e+00> : vector<16x128xf32>
    %12 = tpu.matmul %10, %11, %cst_9 {dimension_numbers = #tpu.dot_dimension_numbers<[1], [0], [0], [1], [0, 0, 1, 1], [], []>} : vector<16x128xf32>, vector<128x128xf32>, vector<16x128xf32> -> vector<16x128xf32>
    %c0_10 = arith.constant 0 : index
    %c0_11 = arith.constant 0 : index
    %13 = vector.load %arg6[%c0_10, %c0_11] : memref<1x128xf32, #tpu.memory_space<vmem>>, vector<1x128xf32>
    %14 = vector.broadcast %13 : vector<1x128xf32> to vector<16x128xf32>
    %15 = arith.addf %12, %14 : vector<16x128xf32>
    %c0_12 = arith.constant 0 : index
    %c0_13 = arith.constant 0 : index
    %16 = vector.load %arg7[%c0_12, %c0_13] : memref<16x128xf32, #tpu.memory_space<vmem>>, vector<16x128xf32>
    tpu.vector_store %arg7[%c0_12, %c0_13], %15 {strides = array<i32>} : memref<16x128xf32, #tpu.memory_space<vmem>>, vector<16x128xf32>,
    return
  }
  func.func @transform_0(%arg0: i32) -> i32 {
    %c0_i32 = arith.constant 0 : i32
    %c0_i32_0 = arith.constant 0 : i32
    return %c0_i32 : i32
  }
  func.func @transform_1(%arg0: i32) -> (i32, i32) {
    %c0_i32 = arith.constant 0 : i32
    %c0_i32_0 = arith.constant 0 : i32
    return %arg0, %c0_i32 : i32, i32
  }
  func.func @transform_2(%arg0: i32) -> (i32, i32) {
    %c0_i32 = arith.constant 0 : i32
    %c0_i32_0 = arith.constant 0 : i32
    %c0_i32_1 = arith.constant 0 : i32
    return %c0_i32, %c0_i32_0 : i32, i32
  }
  func.func @transform_3(%arg0: i32) -> (i32, i32) {
    %c0_i32 = arith.constant 0 : i32
    %c0_i32_0 = arith.constant 0 : i32
    %c0_i32_1 = arith.constant 0 : i32
    return %c0_i32, %c0_i32_0 : i32, i32
  }
  func.func @transform_4(%arg0: i32) -> (i32, i32) {
    %c0_i32 = arith.constant 0 : i32
    %c0_i32_0 = arith.constant 0 : i32
    %c0_i32_1 = arith.constant 0 : i32
    return %c0_i32, %c0_i32_0 : i32, i32
  }
  func.func @transform_5(%arg0: i32) -> (i32, i32) {
    %c0_i32 = arith.constant 0 : i32
    %c0_i32_0 = arith.constant 0 : i32
    %c0_i32_1 = arith.constant 0 : i32
    return %c0_i32, %c0_i32_0 : i32, i32
  }
  func.func @transform_6(%arg0: i32) -> (i32, i32) {
    %c0_i32 = arith.constant 0 : i32
    %c0_i32_0 = arith.constant 0 : i32
    return %arg0, %c0_i32 : i32, i32
  }
}

</mosaic_0001>

<bundles_post_ra>
// kernel: tpu_custom_call.1
= control target key start
LH: loop header
LB: loop body
LE: loop exit
PB: predicated region body
PF: predicated region fallthrough
CT: control target
= control target key end

     0   :  { %12 = vsyncpa [#allocation4], 0  ;;  %s401_s0 = inlined_call_operand.<no memory space> [shape: s32[1], index: 0, kind: input, shape index: {}]   ;;  %s402_s1 = inlined_call_operand.hbm [shape: f32[16,128], index: 1, kind: input, shape index: {}]   ;;  %s403_s2 = inlined_call_operand.hbm [shape: f32[128,128], index: 2, kind: input, shape index: {}]   ;;  %s404_s3 = inlined_call_operand.vmem [shape: f32[1,128], index: 3, kind: input, shape index: {}]   ;;  %s405_s4 = inlined_call_operand.hbm [shape: f32[128,128], index: 4, kind: input, shape index: {}]   ;;  %s406_s5 = inlined_call_operand.vmem [shape: f32[1,128], index: 5, kind: input, shape index: {}]   ;;  %s407_s6 = inlined_call_operand.hbm [shape: f32[16,128], index: 6, kind: output, shape index: {}]  }
   0x1   :  { %13 = vsyncpa [#allocation7], 0 }
   0x2   :  { %14 = vsyncpa [#allocation5], 0  ;;  %s34_s22 = sshll.u32 %s403_s2, 4  ;;  %s330_s23 = smov [#allocation6]   ;;  %s35_s22 = int_to_ptr.hbm [resolvable:$true] %s34_s22 }
   0x3   :  { %s36_s24 = sshll.u32 %s330_s23, 4  ;;  %s21_s27 = sshll.u32 %s402_s1, 4  ;;  %s37_s24 = int_to_ptr.vmem [resolvable:$true] %s36_s24  ;;  %s22_s27 = int_to_ptr.hbm [resolvable:$true] %s21_s27 }
   0x4   :  { %s331_s28 = smov 128   ;;  %s332_s29 = smov 8  }
   0x5   :  { %42 = dma.hbm_to_vmem [thread:$0]  %s35_s22, 2048, %s37_s24, [#allocation7], %s331_s28, %s331_s28, %s332_s29  }
   0x6   :  { %s333_s30 = smov [#allocation3]   ;;  %s49_s2 = sshll.u32 %s405_s4, 4  ;;  %s50_s2 = int_to_ptr.hbm [resolvable:$true] %s49_s2 }
   0x7   :  { %s23_s7 = sshll.u32 %s333_s30, 4  ;;  %s334_s1 = smov [#allocation8]   ;;  %s24_s7 = int_to_ptr.vmem [resolvable:$true] %s23_s7 }
   0x8   :  { %29 = dma.hbm_to_vmem [thread:$0]  %s22_s27, 256, %s24_s7, [#allocation4], %s331_s28, %s331_s28, %s332_s29  }
   0x9   :  { %s51_s10 = sshll.u32 %s334_s1, 4  ;;  %s52_s10 = int_to_ptr.vmem [resolvable:$true] %s51_s10 }
   0xa   :  { %57 = dma.hbm_to_vmem [thread:$0]  %s50_s2, 2048, %s52_s10, [#allocation7], %s331_s28, %s331_s28, %s332_s29  }
   0xb   :  { %324 = dma.done.wait [#allocation4], 256  }
   0xc   :  { %325 = vsyncadd [#allocation4], 4294967040 }
   0xd   :  { %326 = dma.done.wait [#allocation7], 4096  }
   0xe   :  { %327 = vsyncadd [#allocation7], 4294963200  ;;  %v89_v0 = vld [vmem:[#allocation6 + $0x78] sm:$0xff]  ;;  %v88_v1 = vld [vmem:[#allocation6 + $0x70] sm:$0xff]  ;;  %s174_s17 = sshll.u32 %s407_s6, 4  ;;  %s175_s17 = int_to_ptr.hbm [resolvable:$true] %s174_s17 }
   0xf   :  { %188 = vmatpush.msra.mxu2 %v89_v0  ;;  %94 = vmatpush.msra.mxu0 %v89_v0  ;;  %v87_v2 = vld [vmem:[#allocation6 + $0x68] sm:$0xff]  ;;  %v86_v3 = vld [vmem:[#allocation6 + $0x60] sm:$0xff]  ;;  %v85_v4 = vld [vmem:[#allocation6 + $0x58] sm:$0xff] }
  0x10   :  { %v138_v5 = vld [vmem:[#allocation8 + $0x78] sm:$0xff]  ;;  %v137_v6 = vld [vmem:[#allocation8 + $0x70] sm:$0xff]  ;;  %v136_v8 = vld [vmem:[#allocation8 + $0x68] sm:$0xff] }
  0x11   :  { %189 = vmatpush.msra.mxu2 %v88_v1  ;;  %95 = vmatpush.msra.mxu0 %v88_v1  ;;  %v84_v7 = vld [vmem:[#allocation6 + $0x50] sm:$0xff]  ;;  %v83_v9 = vld [vmem:[#allocation6 + $0x48] sm:$0xff]  ;;  %v135_v10 = vld [vmem:[#allocation8 + $0x60] sm:$0xff] }
  0x12   :  { %204 = vmatpush.msra.mxu3 %v138_v5  ;;  %143 = vmatpush.msra.mxu1 %v138_v5  ;;  %v82_v11 = vld [vmem:[#allocation6 + $0x40] sm:$0xff]  ;;  %v134_v12 = vld [vmem:[#allocation8 + $0x58] sm:$0xff]  ;;  %v133_v14 = vld [vmem:[#allocation8 + $0x50] sm:$0xff] }
  0x13   :  { %190 = vmatpush.msra.mxu2 %v87_v2  ;;  %96 = vmatpush.msra.mxu0 %v87_v2  ;;  %v81_v13 = vld [vmem:[#allocation6 + $0x38] sm:$0xff]  ;;  %v80_v15 = vld [vmem:[#allocation6 + $0x30] sm:$0xff]  ;;  %v132_v16 = vld [vmem:[#allocation8 + $0x48] sm:$0xff] }
  0x14   :  { %205 = vmatpush.msra.mxu3 %v137_v6  ;;  %144 = vmatpush.msra.mxu1 %v137_v6  ;;  %v79_v17 = vld [vmem:[#allocation6 + $0x28] sm:$0xff]  ;;  %v131_v18 = vld [vmem:[#allocation8 + $0x40] sm:$0xff]  ;;  %v130_v20 = vld [vmem:[#allocation8 + $0x38] sm:$0xff] }
  0x15   :  { %191 = vmatpush.msra.mxu2 %v86_v3  ;;  %97 = vmatpush.msra.mxu0 %v86_v3  ;;  %v78_v19 = vld [vmem:[#allocation6 + $0x20] sm:$0xff]  ;;  %v77_v21 = vld [vmem:[#allocation6 + $0x18] sm:$0xff]  ;;  %v129_v22 = vld [vmem:[#allocation8 + $0x30] sm:$0xff] }
  0x16   :  { %206 = vmatpush.msra.mxu3 %v136_v8  ;;  %145 = vmatpush.msra.mxu1 %v136_v8  ;;  %v76_v23 = vld [vmem:[#allocation6 + $0x10] sm:$0xff]  ;;  %v128_v24 = vld [vmem:[#allocation8 + $0x28] sm:$0xff]  ;;  %v127_v26 = vld [vmem:[#allocation8 + $0x20] sm:$0xff] }
  0x17   :  { %192 = vmatpush.msra.mxu2 %v85_v4  ;;  %98 = vmatpush.msra.mxu0 %v85_v4  ;;  %v75_v25 = vld [vmem:[#allocation6 + $0x8] sm:$0xff]  ;;  %v74_v27 = vld [vmem:[#allocation6] sm:$0xff]  ;;  %v73_v28 = vld [vmem:[#allocation3 + $0x8] sm:$0xff] }
  0x18   :  { %207 = vmatpush.msra.mxu3 %v135_v10  ;;  %146 = vmatpush.msra.mxu1 %v135_v10  ;;  %v72_v29 = vld [vmem:[#allocation3] sm:$0xff]  ;;  %v126_v30 = vld [vmem:[#allocation8 + $0x18] sm:$0xff]  ;;  %v124_v32 = vld [vmem:[#allocation8 + $0x8] sm:$0xff] }
  0x19   :  { %193 = vmatpush.msra.mxu2 %v84_v7  ;;  %99 = vmatpush.msra.mxu0 %v84_v7  ;;  %v125_v31 = vld [vmem:[#allocation8 + $0x10] sm:$0xff]  ;;  %v123_v33 = vld [vmem:[#allocation8] sm:$0xff] }
  0x1a   :  { %208 = vmatpush.msra.mxu3 %v134_v12  ;;  %147 = vmatpush.msra.mxu1 %v134_v12  ;;  %v226_v34 = vld [vmem:[%s404_s3] ss:$0 sm:$0xff]  ;;  %s335_s3 = smov [#allocation9]  }
  0x1b   :  { %194 = vmatpush.msra.mxu2 %v83_v9  ;;  %100 = vmatpush.msra.mxu0 %v83_v9  ;;  %v227_v43 = vld [vmem:[%s406_s5] ss:$0 sm:$0xff]  ;;  %s172_s14 = sshll.u32 %s335_s3, 4  ;;  %s173_s14 = int_to_ptr.vmem [resolvable:$true] %s172_s14 }
  0x1c   :  { %209 = vmatpush.msra.mxu3 %v133_v14  ;;  %148 = vmatpush.msra.mxu1 %v133_v14 }
  0x1d   :  { %195 = vmatpush.msra.mxu2 %v82_v11  ;;  %101 = vmatpush.msra.mxu0 %v82_v11 }
  0x1e   :  { %210 = vmatpush.msra.mxu3 %v132_v16  ;;  %149 = vmatpush.msra.mxu1 %v132_v16 }
  0x1f   :  { %196 = vmatpush.msra.mxu2 %v81_v13  ;;  %102 = vmatpush.msra.mxu0 %v81_v13 }
  0x20   :  { %211 = vmatpush.msra.mxu3 %v131_v18  ;;  %150 = vmatpush.msra.mxu1 %v131_v18 }
  0x21   :  { %197 = vmatpush.msra.mxu2 %v80_v15  ;;  %103 = vmatpush.msra.mxu0 %v80_v15 }
  0x22   :  { %212 = vmatpush.msra.mxu3 %v130_v20  ;;  %151 = vmatpush.msra.mxu1 %v130_v20 }
  0x23   :  { %198 = vmatpush.msra.mxu2 %v79_v17  ;;  %104 = vmatpush.msra.mxu0 %v79_v17 }
  0x24   :  { %213 = vmatpush.msra.mxu3 %v129_v22  ;;  %152 = vmatpush.msra.mxu1 %v129_v22 }
  0x25   :  { %199 = vmatpush.msra.mxu2 %v78_v19  ;;  %105 = vmatpush.msra.mxu0 %v78_v19 }
  0x26   :  { %214 = vmatpush.msra.mxu3 %v128_v24  ;;  %153 = vmatpush.msra.mxu1 %v128_v24 }
  0x27   :  { %200 = vmatpush.msra.mxu2 %v77_v21  ;;  %106 = vmatpush.msra.mxu0 %v77_v21 }
  0x28   :  { %215 = vmatpush.msra.mxu3 %v127_v26  ;;  %154 = vmatpush.msra.mxu1 %v127_v26 }
  0x29   :  { %201 = vmatpush.msra.mxu2 %v76_v23  ;;  %107 = vmatpush.msra.mxu0 %v76_v23 }
  0x2a   :  { %216 = vmatpush.msra.mxu3 %v126_v30  ;;  %155 = vmatpush.msra.mxu1 %v126_v30 }
  0x2b   :  { %202 = vmatpush.msra.mxu2 %v75_v25  ;;  %108 = vmatpush.msra.mxu0 %v75_v25 }
  0x2c   :  { %217 = vmatpush.msra.mxu3 %v125_v31  ;;  %156 = vmatpush.msra.mxu1 %v125_v31 }
  0x2d   :  { %203 = vmatpush.msra.mxu2 %v74_v27  ;;  %109 = vmatpush.msra.mxu0 %v74_v27 }
  0x2e   :  { %113 = vmatmul.f32.vlgmr.msra.gmra.mxu2 %v73_v28  ;;  %110 = vmatmul.f32.vlgmr.msra.gmra.mxu0 %v72_v29 }
  0x2f   :  { %218 = vmatpush.msra.mxu3 %v124_v32  ;;  %157 = vmatpush.msra.mxu1 %v124_v32 }
  0x31   :  { %219 = vmatpush.msra.mxu3 %v123_v33  ;;  %158 = vmatpush.msra.mxu1 %v123_v33 }
  0xab   :  { %v111_v35 = vpop.f32.mrf.mxu0 }
  0xac   :  { %v112_v36 = vadd.f32 %v226_v34, %v111_v35 }
  0xae   :  { %vm117_vm0 = vcmp.gt.f32.partialorder %v112_v36, 0.0  ;;  %v119_v37 = vmul.f32 0.2, %v112_v36 }
  0xb0   :  { %v121_v38 = vsel %vm117_vm0, %v112_v36, %v119_v37 }
  0xb1   :  { %v114_v39 = vpop.f32.mrf.mxu2  ;;  %159 = vmatmul.f32.vlgmr.msra.gmra.mxu1 %v121_v38 }
  0xb2   :  { %v115_v40 = vadd.f32 %v226_v34, %v114_v39 }
  0xb4   :  { %vm118_vm1 = vcmp.gt.f32.partialorder %v115_v40, 0.0  ;;  %v120_v41 = vmul.f32 0.2, %v115_v40 }
  0xb6   :  { %v122_v42 = vsel %vm118_vm1, %v115_v40, %v120_v41 }
  0xb7   :  { %162 = vmatmul.f32.vlgmr.msra.gmra.mxu3 %v122_v42 }
 0x12e   :  { %v160_v44 = vpop.f32.mrf.mxu1 }
 0x12f   :  { %v161_v45 = vadd.f32 %v227_v43, %v160_v44 }
 0x131   :  { %166 = vst [vmem:[#allocation9] sm:$0xff] %v161_v45 }
 0x13a   :  { %v163_v46 = vpop.f32.mrf.mxu3 }
 0x13b   :  { %v164_v47 = vadd.f32 %v227_v43, %v163_v46 }
 0x13d   :  { %167 = vst [vmem:[#allocation9 + $0x8] sm:$0xff] %v164_v47 }
 0x13e   :  { %180 = dma.vmem_to_hbm [thread:$0]  %s173_s14, 256, %s175_s17, [#allocation5], %s331_s28, %s331_s28, %s332_s29  }
 0x13f   :  { %328 = dma.done.wait [#allocation5], 256  }
 0x140   :  { %329 = vsyncadd [#allocation5], 4294967040 }
 0x141   :  { %185 = vsyncpa [#allocation4], 1 }
 0x142   :  { %186 = vsyncpa [#allocation7], 1 }
 0x143   :  { %187 = vsyncpa [#allocation5], 1 }

</bundles_post_ra>
